<compile_context>
chip_gen: v7x
topology: tpu7x:2x2x1
jax: 0.10.0
libtpu: 0.0.40
codegen_flags: <defaults>
</compile_context>

<pallas_src>
import functools

import jax
import jax.numpy as jnp
from jax import lax
from jax.experimental import pallas as pl
from jax.experimental.pallas import tpu as pltpu

N_BUF = 8  # outstanding row-gather DMAs on the HBM path (power of two)


def _round_up(x, m):
    return (x + m - 1) // m * m


def _vmem_capacity_bytes():
    try:
        cap = int(pltpu.get_tpu_info().vmem_capacity_bytes)
        if cap > 0:
            return cap
    except Exception:
        pass
    return 64 << 20  # conservative default (v7x per-core VMEM)


def _text_sentiment_kernel(offsets_ref, text_ref,          # scalar prefetch (SMEM)
                           emb_ref, w_ref, b_ref,          # inputs
                           out_ref,                        # (b_tile, c_pad) output
                           acc_ref,                        # (b_tile, d_pad) f32 scratch
                           *gather_scratch,                # (row_buf, sem) on HBM path
                           b_tile, table_in_vmem):
    tile = pl.program_id(0)
    d_pad = acc_ref.shape[1]
    vocab = emb_ref.shape[0]
    bag0 = tile * b_tile

    if table_in_vmem:
        # ---- Fast path: table resident in VMEM; gather = dynamic row loads.
        def bag_body(bb, carry):
            start = offsets_ref[bag0 + bb]
            end = offsets_ref[bag0 + bb + 1]

            def tok_body(t, acc):
                # Clamp defends against out-of-range ids (keeps loads in-bounds).
                tok = jnp.clip(text_ref[t], 0, vocab - 1)
                return acc + emb_ref[pl.ds(tok, 1), :].astype(jnp.float32)

            acc = lax.fori_loop(start, end, tok_body,
                                jnp.zeros((1, d_pad), jnp.float32))
            denom = jnp.maximum(end - start, 1).astype(jnp.float32)
            acc_ref[pl.ds(bb, 1), :] = acc / denom
            return carry

        lax.fori_loop(0, b_tile, bag_body, 0)
    else:
        # ---- Fallback: table stays in HBM; continuous per-tile DMA ring.
        row_buf, sem = gather_scratch
        tile_start = offsets_ref[bag0]
        tile_end = offsets_ref[bag0 + b_tile]

        def fetch(t):
            # Slot keyed on the *global* token position within the tile, so the
            # ring keeps N_BUF-1 copies in flight straight across bag edges.
            slot = (t - tile_start) & (N_BUF - 1)
            tok = jnp.clip(text_ref[t], 0, vocab - 1)
            pltpu.make_async_copy(emb_ref.at[pl.ds(tok, 1), :],
                                  row_buf.at[slot], sem.at[slot]).start()

        # Prime the ring once per tile (not once per bag).
        for k in range(N_BUF - 1):
            @pl.when(tile_start + k < tile_end)
            def _(k=k):
                fetch(tile_start + k)

        def bag_body(bb, carry):
            start = offsets_ref[bag0 + bb]
            end = offsets_ref[bag0 + bb + 1]

            def tok_body(t, acc):
                slot = (t - tile_start) & (N_BUF - 1)
                # NOTE: the wait descriptor's shape must match the started
                # copy's (1, d_pad) row; the source here is shape-only.
                pltpu.make_async_copy(emb_ref.at[pl.ds(0, 1), :],
                                      row_buf.at[slot], sem.at[slot]).wait()

                # Keep the ring N_BUF - 1 tokens ahead, across bag boundaries.
                @pl.when(t + (N_BUF - 1) < tile_end)
                def _():
                    fetch(t + (N_BUF - 1))

                return acc + row_buf[slot].astype(jnp.float32)

            acc = lax.fori_loop(start, end, tok_body,
                                jnp.zeros((1, d_pad), jnp.float32))
            denom = jnp.maximum(end - start, 1).astype(jnp.float32)
            acc_ref[pl.ds(bb, 1), :] = acc / denom
            return carry

        lax.fori_loop(0, b_tile, bag_body, 0)

    # TODO(synk): sublane-pack the per-bag accumulation (8 rows per VPU add +
    # XLU reduce) once the gather itself is no longer the bottleneck.

    # One batched MXU matmul per tile: (b_tile, d_pad) @ (d_pad, c_pad) + bias.
    out_ref[...] = (
        jnp.dot(acc_ref[...], w_ref[...], preferred_element_type=jnp.float32)
        + b_ref[...]).astype(out_ref.dtype)


def text_sentiment_forward(text, offsets, emb_w, fc_w, fc_b,
                           *, b_tile=None, table_in_vmem=None):
    """EmbeddingBag(mean) + Linear in a single Pallas TPU kernel.

    text:    (T,)   int token ids (flat, concatenated bags)
    offsets: (B,)   int bag start offsets (PyTorch convention)
    emb_w:   (V, D) embedding weight (f32 or bf16; accumulation is f32)
    fc_w:    (C, D) Linear weight (PyTorch layout)
    fc_b:    (C,)   Linear bias
    returns: (B, C) float32
    """
    B = int(offsets.shape[0])
    T = int(text.shape[0])
    V, D = emb_w.shape
    C = fc_w.shape[0]

    d_pad = _round_up(D, 128)
    c_pad = _round_up(C, 128)

    if b_tile is None:
        # Fill the MXU (up to 128 rows per matmul) but keep >= 2 grid steps
        # when the batch allows, so v7x's second TensorCore gets a "parallel"
        # step.  (256 would fill v6e/v7x's 256-wide MXU fully; 128 is a safe
        # compromise across generations.)
        b_tile = max(8, min(128, _round_up((B + 1) // 2, 8)))
    b_tile = _round_up(max(int(b_tile), 1), 8)
    b_pad = _round_up(B, b_tile)
    num_tiles = b_pad // b_tile

    # Pad operands to lane-dense shapes (zero padding does not affect the math).
    emb_p = jnp.pad(emb_w, ((0, 0), (0, d_pad - D)))
    w_t = jnp.pad(fc_w.T.astype(jnp.float32),
                  ((0, d_pad - D), (0, c_pad - C)))            # (d_pad, c_pad)
    b_p = jnp.pad(fc_b.astype(jnp.float32), (0, c_pad - C)).reshape(1, c_pad)

    itemsize = jnp.dtype(emb_p.dtype).itemsize
    table_bytes = V * d_pad * itemsize
    cap = _vmem_capacity_bytes()
    if table_in_vmem is None:
        # The constant-index table block gets double-buffered; keep half of
        # VMEM as headroom for weights / accumulator / output pipeline buffers.
        # TODO(synk): single-buffer constant blocks (pl.Buffered(1)) to double
        # this threshold, esp. on v7x's 64 MiB VMEM.
        table_in_vmem = (2 * table_bytes) <= (cap // 2)

    # Extend offsets: append bag ends; padded bags are empty (start = end = T).
    offsets_ext = jnp.concatenate(
        [offsets.astype(jnp.int32),
         jnp.full((b_pad - B + 1,), T, jnp.int32)])

    if table_in_vmem:
        emb_spec = pl.BlockSpec((V, d_pad), lambda i, off, txt: (0, 0))
        gather_scratch = []
    else:
        emb_spec = pl.BlockSpec(memory_space=pl.ANY)           # table stays in HBM
        gather_scratch = [pltpu.VMEM((N_BUF, 1, d_pad), emb_p.dtype),
                          pltpu.SemaphoreType.DMA((N_BUF,))]

    # TODO(synk): for very large token streams, stage per-tile token-id chunks
    # into SMEM via DMA instead of scalar-prefetching the whole flat text array.
    grid_spec = pltpu.PrefetchScalarGridSpec(
        num_scalar_prefetch=2,                 # offsets_ext, text -> SMEM
        grid=(num_tiles,),
        in_specs=[
            emb_spec,                                                    # emb table
            pl.BlockSpec((d_pad, c_pad), lambda i, off, txt: (0, 0)),    # fc W^T
            pl.BlockSpec((1, c_pad), lambda i, off, txt: (0, 0)),        # fc bias
        ],
        out_specs=pl.BlockSpec((b_tile, c_pad), lambda i, off, txt: (i, 0)),
        scratch_shapes=[pltpu.VMEM((b_tile, d_pad), jnp.float32)]        # bag means
                       + gather_scratch,
    )

    # Only raise the scoped-VMEM limit when we actually need more than the
    # typical default; otherwise leave the compiler default alone.
    fixed = 2 * (int(w_t.size) + int(b_p.size) + b_tile * c_pad) * 4 \
            + b_tile * d_pad * 4
    need = fixed + (2 * table_bytes if table_in_vmem
                    else 2 * N_BUF * d_pad * itemsize) + (2 << 20)
    cp_kwargs = dict(dimension_semantics=("parallel",))
    if need > (32 << 20):
        cp_kwargs["vmem_limit_bytes"] = int(min(need, (cap * 9) // 10))

    out = pl.pallas_call(
        functools.partial(_text_sentiment_kernel,
                          b_tile=b_tile, table_in_vmem=bool(table_in_vmem)),
        out_shape=jax.ShapeDtypeStruct((b_pad, c_pad), jnp.float32),
        grid_spec=grid_spec,
        compiler_params=pltpu.CompilerParams(**cp_kwargs),
    )(offsets_ext, text.astype(jnp.int32), emb_p, w_t, b_p)

    return out[:B, :C]


def _reference(text, offsets, emb_w, fc_w, fc_b):
    """Pure-JAX reference for EmbeddingBag(mean) + Linear."""
    T = text.shape[0]
    B = offsets.shape[0]
    ends = jnp.concatenate([offsets[1:], jnp.array([T], jnp.int32)])
    rows = emb_w[text].astype(jnp.float32)
    bags = [rows[int(offsets[b]):int(ends[b])].mean(axis=0) for b in range(B)]
    return jnp.stack(bags) @ fc_w.T.astype(jnp.float32) + fc_b.astype(jnp.float32)


if __name__ == "__main__":
    key = jax.random.PRNGKey(0)
    k_emb, k_fc, k_txt, k_len, k_t2, k_e2, k_w2, k_b2 = jax.random.split(key, 8)

    # ----- Case 1: module-sized small shapes (mirrors init_weights) --------
    vocab_size, embed_dim, num_class = 64, 32, 4
    batch, total_tokens = 2, 8
    initrange = 0.5
    emb_w = jax.random.uniform(k_emb, (vocab_size, embed_dim), jnp.float32,
                               -initrange, initrange)
    fc_w = jax.random.uniform(k_fc, (num_class, embed_dim), jnp.float32,
                              -initrange, initrange)
    fc_b = jnp.zeros((num_class,), jnp.float32)
    text = jax.random.randint(k_txt, (total_tokens,), 0, vocab_size, jnp.int32)
    offsets = jnp.array([0, 3], jnp.int32)   # bag 0: tokens [0,3), bag 1: [3,8)

    ref1 = _reference(text, offsets, emb_w, fc_w, fc_b)
    out1_vmem = jax.block_until_ready(
        text_sentiment_forward(text, offsets, emb_w, fc_w, fc_b))
    out1_hbm = jax.block_until_ready(
        text_sentiment_forward(text, offsets, emb_w, fc_w, fc_b,
                               table_in_vmem=False))
    assert out1_vmem.shape == (batch, num_class)
    assert jnp.allclose(out1_vmem, ref1, atol=1e-5, rtol=1e-5), (out1_vmem, ref1)
    assert jnp.allclose(out1_hbm, ref1, atol=1e-5, rtol=1e-5), (out1_hbm, ref1)

    # ----- Case 2: multi-tile batch, uneven bags (exercises tiling/padding) --
    B2, V2, D2, C2 = 20, 200, 48, 5
    lens = jax.random.randint(k_len, (B2,), 1, 7, jnp.int32)
    offs2 = jnp.concatenate([jnp.zeros((1,), jnp.int32),
                             jnp.cumsum(lens)[:-1].astype(jnp.int32)])
    T2 = int(jnp.sum(lens))
    text2 = jax.random.randint(k_t2, (T2,), 0, V2, jnp.int32)
    emb2 = jax.random.uniform(k_e2, (V2, D2), jnp.float32, -0.5, 0.5)
    fcw2 = jax.random.uniform(k_w2, (C2, D2), jnp.float32, -0.5, 0.5)
    fcb2 = jax.random.uniform(k_b2, (C2,), jnp.float32, -0.5, 0.5)

    ref2 = _reference(text2, offs2, emb2, fcw2, fcb2)
    out2_vmem = jax.block_until_ready(
        text_sentiment_forward(text2, offs2, emb2, fcw2, fcb2))
    out2_hbm = jax.block_until_ready(
        text_sentiment_forward(text2, offs2, emb2, fcw2, fcb2,
                               table_in_vmem=False))
    assert out2_vmem.shape == (B2, C2)
    assert jnp.allclose(out2_vmem, ref2, atol=5e-5, rtol=5e-5), (out2_vmem, ref2)
    assert jnp.allclose(out2_hbm, ref2, atol=5e-5, rtol=5e-5), (out2_hbm, ref2)

    print("KERNEL_OK")
</pallas_src>

<mosaic_0001>
module attributes {stable_mosaic.version = 11 : i64} {
  func.func @_text_sentiment_kernel(%arg0: i32, %arg1: memref<9xi32, #tpu.memory_space<smem>>, %arg2: memref<8xi32, #tpu.memory_space<smem>>, %arg3: memref<64x128xf32, #tpu.memory_space<vmem>>, %arg4: memref<128x128xf32, #tpu.memory_space<vmem>>, %arg5: memref<1x128xf32, #tpu.memory_space<vmem>>, %arg6: memref<8x128xf32, #tpu.memory_space<vmem>>, %arg7: memref<8x128xf32, #tpu.memory_space<vmem>>) attributes {dimension_semantics = [#tpu.dimension_semantics<parallel>], iteration_bounds = array<i64: 1>, scalar_prefetch = 2 : i64, scratch_operands = 1 : i64, tpu.core_type = #tpu.core_type<tc>, window_params = [{pipeline_mode = #tpu.pipeline_mode<synchronous>, transform_indices = @transform_0, window_bounds = array<i64: 64, 128>}, {pipeline_mode = #tpu.pipeline_mode<synchronous>, transform_indices = @transform_1, window_bounds = array<i64: 128, 128>}, {pipeline_mode = #tpu.pipeline_mode<synchronous>, transform_indices = @transform_2, window_bounds = array<i64: 1, 128>}, {transform_indices = @transform_3, window_bounds = array<i64: 8, 128>}]} {
    %c8_i32 = arith.constant 8 : i32
    %0 = arith.muli %arg0, %c8_i32 : i32
    %c0_i32 = arith.constant 0 : i32
    %c8_i32_0 = arith.constant 8 : i32
    %1 = arith.addi %c0_i32, %c8_i32_0 : i32
    %c1_i32 = arith.constant 1 : i32
    scf.for %arg8 = %c0_i32 to %1 step %c1_i32  : i32 {
      %9 = arith.addi %0, %arg8 : i32
      %10 = arith.index_cast %9 : i32 to index
      %11 = memref.load %arg1[%10] : memref<9xi32, #tpu.memory_space<smem>>
      %12 = arith.addi %0, %arg8 : i32
      %c1_i32_9 = arith.constant 1 : i32
      %13 = arith.addi %12, %c1_i32_9 : i32
      %14 = arith.index_cast %13 : i32 to index
      %15 = memref.load %arg1[%14] : memref<9xi32, #tpu.memory_space<smem>>
      %cst_10 = arith.constant 0.000000e+00 : f32
      %16 = vector.broadcast %cst_10 : f32 to vector<1x128xf32>
      %17 = arith.subi %15, %11 : i32
      %18 = arith.addi %11, %17 : i32
      %c1_i32_11 = arith.constant 1 : i32
      %19 = scf.for %arg9 = %11 to %18 step %c1_i32_11 iter_args(%arg10 = %16) -> (vector<1x128xf32>)  : i32 {
        %27 = arith.index_cast %arg9 : i32 to index
        %28 = memref.load %arg2[%27] : memref<8xi32, #tpu.memory_space<smem>>
        %c0_i32_14 = arith.constant 0 : i32
        %c63_i32 = arith.constant 63 : i32
        %29 = arith.maxsi %c0_i32_14, %28 : i32
        %30 = arith.minsi %c63_i32, %29 : i32
        %31 = arith.index_cast %30 : i32 to index
        %c0_15 = arith.constant 0 : index
        %32 = vector.load %arg3[%31, %c0_15] : memref<64x128xf32, #tpu.memory_space<vmem>>, vector<1x128xf32>
        %33 = arith.addf %arg10, %32 : vector<1x128xf32>
        scf.yield %33 : vector<1x128xf32>
      }
      %20 = arith.subi %15, %11 : i32
      %c1_i32_12 = arith.constant 1 : i32
      %21 = arith.maxsi %20, %c1_i32_12 : i32
      %22 = arith.sitofp %21 : i32 to f32
      %23 = vector.broadcast %22 : f32 to vector<1x128xf32>
      %24 = arith.divf %19, %23 : vector<1x128xf32>
      %25 = arith.index_cast %arg8 : i32 to index
      %c0_13 = arith.constant 0 : index
      %26 = vector.load %arg7[%25, %c0_13] : memref<8x128xf32, #tpu.memory_space<vmem>>, vector<1x128xf32>
      tpu.vector_store %arg7[%25, %c0_13], %24 {strides = array<i32>} : memref<8x128xf32, #tpu.memory_space<vmem>>, vector<1x128xf32>,
    }
    %c8_i32_1 = arith.constant 8 : i32
    %c0 = arith.constant 0 : index
    %c0_2 = arith.constant 0 : index
    %2 = vector.load %arg7[%c0, %c0_2] : memref<8x128xf32, #tpu.memory_space<vmem>>, vector<8x128xf32>
    %c0_3 = arith.constant 0 : index
    %c0_4 = arith.constant 0 : index
    %3 = vector.load %arg4[%c0_3, %c0_4] : memref<128x128xf32, #tpu.memory_space<vmem>>, vector<128x128xf32>
    %cst = arith.constant dense<0.000000e+00> : vector<8x128xf32>
    %4 = tpu.matmul %2, %3, %cst {dimension_numbers = #tpu.dot_dimension_numbers<[1], [0], [0], [1], [0, 0, 1, 1], [], []>} : vector<8x128xf32>, vector<128x128xf32>, vector<8x128xf32> -> vector<8x128xf32>
    %c0_5 = arith.constant 0 : index
    %c0_6 = arith.constant 0 : index
    %5 = vector.load %arg5[%c0_5, %c0_6] : memref<1x128xf32, #tpu.memory_space<vmem>>, vector<1x128xf32>
    %6 = vector.broadcast %5 : vector<1x128xf32> to vector<8x128xf32>
    %7 = arith.addf %4, %6 : vector<8x128xf32>
    %c0_7 = arith.constant 0 : index
    %c0_8 = arith.constant 0 : index
    %8 = vector.load %arg6[%c0_7, %c0_8] : memref<8x128xf32, #tpu.memory_space<vmem>>, vector<8x128xf32>
    tpu.vector_store %arg6[%c0_7, %c0_8], %7 {strides = array<i32>} : memref<8x128xf32, #tpu.memory_space<vmem>>, vector<8x128xf32>,
    return
  }
  func.func @transform_0(%arg0: i32, %arg1: memref<9xi32, #tpu.memory_space<smem>>, %arg2: memref<8xi32, #tpu.memory_space<smem>>) -> (i32, i32) {
    %c0_i32 = arith.constant 0 : i32
    %c0_i32_0 = arith.constant 0 : i32
    %c0_i32_1 = arith.constant 0 : i32
    return %c0_i32, %c0_i32_0 : i32, i32
  }
  func.func @transform_1(%arg0: i32, %arg1: memref<9xi32, #tpu.memory_space<smem>>, %arg2: memref<8xi32, #tpu.memory_space<smem>>) -> (i32, i32) {
    %c0_i32 = arith.constant 0 : i32
    %c0_i32_0 = arith.constant 0 : i32
    %c0_i32_1 = arith.constant 0 : i32
    return %c0_i32, %c0_i32_0 : i32, i32
  }
  func.func @transform_2(%arg0: i32, %arg1: memref<9xi32, #tpu.memory_space<smem>>, %arg2: memref<8xi32, #tpu.memory_space<smem>>) -> (i32, i32) {
    %c0_i32 = arith.constant 0 : i32
    %c0_i32_0 = arith.constant 0 : i32
    %c0_i32_1 = arith.constant 0 : i32
    return %c0_i32, %c0_i32_0 : i32, i32
  }
  func.func @transform_3(%arg0: i32, %arg1: memref<9xi32, #tpu.memory_space<smem>>, %arg2: memref<8xi32, #tpu.memory_space<smem>>) -> (i32, i32) {
    %c0_i32 = arith.constant 0 : i32
    %c0_i32_0 = arith.constant 0 : i32
    return %arg0, %c0_i32 : i32, i32
  }
}

</mosaic_0001>

<bundles_post_ra>
// kernel: tpu_custom_call.1
= control target key start
LH: loop header
LB: loop body
LE: loop exit
PB: predicated region body
PF: predicated region fallthrough
CT: control target
= control target key end

     0   :  { %s584_s0 = inlined_call_operand.hbm [shape: s32[9], index: 0, kind: input, shape index: {}]   ;;  %s585_s2 = inlined_call_operand.hbm [shape: f32[64,128], index: 2, kind: input, shape index: {}]   ;;  %s586_s3 = inlined_call_operand.hbm [shape: f32[128,128], index: 3, kind: input, shape index: {}]   ;;  %s587_s4 = inlined_call_operand.vmem [shape: f32[1,128], index: 4, kind: input, shape index: {}]   ;;  %s588_s5 = inlined_call_operand.hbm [shape: f32[8,128], index: 5, kind: output, shape index: {}]   ;;  %s589_s1 = inlined_call_operand.vmem [shape: s32[8], index: 1, kind: input, shape index: {}]  }
   0x1   :  { %s342_s20 = scalar_lea.hbm %s584_s0, 16 }
   0x2   :  { %p343_p0 = scmp.ne.s32.totalorder %s584_s0, %s342_s20  ;;  %p346_p1 = scmp.lt.u32.totalorder %s342_s20, %s584_s0 }
   0x4   :  { %p348_p2 = pnand %p346_p1, %p343_p0 }
   0x6   :  { %351 = shalt.err (!%p348_p2)  }
   0x7   :  { %s470_s25 = smov [#allocation4]   ;;  %s12_s30 = sshll.u32 %s589_s1, 4  ;;  %s13_s30 = int_to_ptr.vmem [resolvable:$true] %s12_s30 }
   0x8   :  { %11 = dma.hbm_to_smem %s584_s0, 16, %s470_s25, [#allocation3] }
   0x9   :  { %s352_s6 = scalar_lea.vmem %s13_s30, 16  ;;  %p357_p4 = scmp.lt.s32.totalorder %s13_s30, %s13_s30 }
   0xa   :  { %p353_p3 = scmp.ne.s32.totalorder %s13_s30, %s352_s6  ;;  %p358_p5 = scmp.lt.s32.totalorder %s352_s6, %s352_s6 }
   0xc   :  { %p359_p6 = por %p358_p5, %p357_p4 }
   0xe   :  { %p360_p7 = pnand %p359_p6, %p353_p3 }
  0x10   :  { %363 = shalt.err (!%p360_p7)  }
  0x11   :  { %s471_s7 = smov [#allocation5]  }
  0x12   :  { %15 = dma.vmem_to_smem %s13_s30, 16, %s471_s7, [#allocation3] }
  0x13   :  { %446 = dma.done.wait [#allocation3], 32 }
  0x14   :  { %447 = vsyncadd [#allocation3], 4294967264 }
  0x15   :  { %17 = sfence }
  0x16   :  { %18 = vsyncpa [#allocation7], 0 }
  0x17   :  { %19 = vsyncpa [#allocation10], 0 }
  0x18   :  { %20 = vsyncpa [#allocation8], 0  ;;  %s472_s0 = smov [#allocation6]   ;;  %s364_s10 = scalar_lea.hbm %s585_s2, 1024 }
  0x19   :  { %s26_s8 = sshll.u32 %s472_s0, 4  ;;  %p365_p8 = scmp.ne.s32.totalorder %s585_s2, %s364_s10  ;;  %s27_s8 = int_to_ptr.vmem [resolvable:$true] %s26_s8 }
  0x1a   :  { %p368_p9 = scmp.lt.u32.totalorder %s364_s10, %s585_s2 }
  0x1c   :  { %p370_p10 = pnand %p368_p9, %p365_p8 }
  0x1e   :  { %373 = shalt.err (!%p370_p10)
}
  0x1f   :  { %s374_s15 = scalar_lea.vmem %s27_s8, 1024  ;;  %p379_p12 = scmp.lt.s32.totalorder %s27_s8, %s27_s8 }
  0x20   :  { %p375_p11 = scmp.ne.s32.totalorder %s27_s8, %s374_s15  ;;  %p380_p13 = scmp.lt.s32.totalorder %s374_s15, %s374_s15 }
  0x22   :  { %p381_p0 = por %p380_p13, %p379_p12 }
  0x24   :  { %p382_p1 = pnand %p381_p0, %p375_p11 }
  0x26   :  { %385 = shalt.err (!%p382_p1)
}
  0x27   :  { %s473_s16 = smov 128   ;;  %s474_s17 = smov 8  }
  0x28   :  { %32 = dma.hbm_to_vmem [thread:$0]  %s585_s2, 1024, %s27_s8, [#allocation7], %s473_s16, %s473_s16, %s474_s17  }
  0x29   :  { %s475_s20 = smov [#allocation9]   ;;  %s386_s24 = scalar_lea.hbm %s586_s3, 2048 }
  0x2a   :  { %s38_s21 = sshll.u32 %s475_s20, 4  ;;  %p387_p2 = scmp.ne.s32.totalorder %s586_s3, %s386_s24  ;;  %s39_s21 = int_to_ptr.vmem [resolvable:$true] %s38_s21 }
  0x2b   :  { %p390_p3 = scmp.lt.u32.totalorder %s386_s24, %s586_s3 }
  0x2d   :  { %p392_p4 = pnand %p390_p3, %p387_p2 }
  0x2f   :  { %395 = shalt.err (!%p392_p4)
}
  0x30   :  { %s396_s29 = scalar_lea.vmem %s39_s21, 2048  ;;  %p401_p6 = scmp.lt.s32.totalorder %s39_s21, %s39_s21 }
  0x31   :  { %p397_p5 = scmp.ne.s32.totalorder %s39_s21, %s396_s29  ;;  %p402_p7 = scmp.lt.s32.totalorder %s396_s29, %s396_s29 }
  0x33   :  { %p403_p8 = por %p402_p7, %p401_p6 }
  0x35   :  { %p404_p9 = pnand %p403_p8, %p397_p5 }
  0x37   :  { %407 = shalt.err (!%p404_p9)
}
  0x38   :  { %44 = dma.hbm_to_vmem [thread:$0]  %s586_s3, 2048, %s39_s21, [#allocation10], %s473_s16, %s473_s16, %s474_s17  }
  0x39   :  { %448 = dma.done.wait [#allocation7], 1024  }
  0x3a   :  { %449 = vsyncadd [#allocation7], 4294966272 }
  0x3b   :  { %450 = dma.done.wait [#allocation10], 2048  }
  0x3c   :  { %451 = vsyncadd [#allocation10], 4294965248  ;;  %s549_s6 = smov 0  }
  0x3d LB: > { %s555_s7 = sld [smem:[#allocation4 + %s456_s6]]   ;;  %s558_s0 = sadd.s32 1, %s456_s6   ;;  %v466_v0 = vmov 0.0   ;;  %s456_s6 = sphi %s549_s6, %s590_s6  }
  0x3e   : > { %s63_s8 = sld [smem:[#allocation4 + %s558_s0]] }
  0x44   : > { %p202_p10 = scmp.ge.s32.totalorder %s555_s7, %s63_s8 }
  0x45   : > { %v458_v1 = vmov (!%p202_p10), 0.0   ;;  %s462_s3 = smov (!%p202_p10), %s555_s7  }
  0x46   : > { %204 = sbr.rel (%p202_p10) target bundleno = 92 (0x5c), region = 50 }
  0x4d LB: >> { %s71_s1 = sld [smem:[#allocation5 + %s464_s3]]  ;;  %s67_s3 = sadd.s32 1, %s464_s3   ;;  %s464_s3 = sphi %s462_s3, %s67_s3   ;;  %v460_v1 = vphi %v458_v1, %v459_v1  }
  0x4e   : >> { %p66_p13 = scmp.ge.s32.totalorder %s67_s3, %s63_s8 }
  0x53   : >> { %p72_p11 = scmp.gt.s32.totalorder %s71_s1, 0  ;;  %p214_p12 = scmp.lt.s32.totalorder %s71_s1, 63 }
  0x55   : >> { %s592_s1 = smov (!%p72_p11, %s71_s1), 0  ;;  %69 = sbr.rel (!%p66_p13) target bundleno = 77 (0x4d), region = 56 }
  0x56   : >> { %s594_s1 = smov (!%p214_p12, %s592_s1), 63 }
  0x57   : >> { %s76_s9 = scalar_lea.vmem [#allocation6], %s594_s1 }
  0x58   : >> { %v77_v2 = vld [vmem:[%s76_s9] sm:$0x1] }
  0x59   : >> { %v78_v3 = vadd.f32 %v460_v1, %v77_v2  }
  0x5b   : >> { %v459_v1 = vmov %v78_v3   ;;  %v467_v0 = vmov (%p66_p13), %v78_v3  }
  0x5c PF: > { %s79_s10 = ssub.s32 %s63_s8, %s555_s7  ;;  %s86_s12 = scalar_lea.vmem [#allocation2], %s456_s6  ;;  %v468_v0 = vphi %v466_v0, %v467_v0  }
  0x5d   : > { %p80_p0 = scmp.gt.s32.totalorder %s79_s10, 1  ;;  %p56_p1 = scmp.ge.s32.totalorder %s558_s0, 8  }
  0x5e   : > { %s590_s6 = smov %s558_s0  ;;  %v89_v7 = vld [vmem:[#allocation9] sm:$0xff] (%p56_p1)  ;;  %v90_v8 = vld [vmem:[#allocation9 + $0x8] sm:$0xff] (%p56_p1)  ;;  %v91_v9 = vld [vmem:[#allocation9 + $0x10] sm:$0xff] (%p56_p1)  ;;  %v476_v10 = vmov (%p56_p1), 0.0|0.0   ;;  %vm477_vm0 = vmmov (%p56_p1), 0   ;;  %v478_v13 = vmov (%p56_p1), 0.0  }
  0x5f   : > { %s596_s10 = smov (!%p80_p0, %s79_s10), 1  ;;  %274 = vmatprep.subr.bf16.mxu0 (%p56_p1), %v476_v10  ;;  %v275_v11 = vpack.c.bf16 (%p56_p1), %v90_v8, %v89_v7  ;;  %v92_v12 = vld [vmem:[#allocation9 + $0x18] sm:$0xff] (%p56_p1)  ;;  %271 = vmatprep.mubr.msk.f32.mxu0 (%p56_p1), %vm477_vm0, %v478_v13  ;;  %v93_v15 = vld [vmem:[#allocation9 + $0x20] sm:$0xff] (%p56_p1)  ;;  %v94_v16 = vld [vmem:[#allocation9 + $0x28] sm:$0xff] (%p56_p1)  ;;  %s479_s15 = smov (%p56_p1), [#allocation11]  }
  0x60   : > { %s82_s11 = scvt.s32.f32 %s596_s10  ;;  %v278_v14 = vpack.c.bf16 (%p56_p1), %v92_v12, %v91_v9  ;;  %v281_v17 = vpack.c.bf16 (%p56_p1), %v94_v16, %v93_v15  ;;  %v95_v18 = vld [vmem:[#allocation9 + $0x30] sm:$0xff] (%p56_p1)  ;;  %v96_v19 = vld [vmem:[#allocation9 + $0x38] sm:$0xff] (%p56_p1)  ;;  %v97_v21 = vld [vmem:[#allocation9 + $0x40] sm:$0xff] (%p56_p1)  ;;  %s189_s16 = sshll.u32 (%p56_p1), %s479_s15, 4  ;;  %s190_s16 = int_to_ptr.vmem [resolvable:$true] %s189_s16 }
  0x61   :  { %276 = vmatpush3.bf16.msra.mxu0 (%p56_p1), %v275_v11  ;;  %v284_v20 = vpack.c.bf16 (%p56_p1), %v96_v19, %v95_v18  ;;  %v98_v22 = vld [vmem:[#allocation9 + $0x48] sm:$0xff] (%p56_p1)  ;;  %v99_v24 = vld [vmem:[#allocation9 + $0x50] sm:$0xff] (%p56_p1)  ;;  %v100_v25 = vld [vmem:[#allocation9 + $0x58] sm:$0xff] (%p56_p1)  ;;  %s408_s17 = scalar_lea.vmem (%p56_p1), %s190_s16, 128  ;;  %p413_p3 = scmp.lt.s32.totalorder (%p56_p1), %s190_s16, %s190_s16 }
  0x62   : > { %v83_v4 = vstv %s82_s11  ;;  %277 = vmatprep.subr.bf16.mxu0 (%p56_p1), %v476_v10  ;;  %v287_v23 = vpack.c.bf16 (%p56_p1), %v98_v22, %v97_v21  ;;  %v290_v26 = vpack.c.bf16 (%p56_p1), %v100_v25, %v99_v24  ;;  %v101_v27 = vld [vmem:[#allocation9 + $0x60] sm:$0xff] (%p56_p1)  ;;  %v102_v28 = vld [vmem:[#allocation9 + $0x68] sm:$0xff] (%p56_p1)  ;;  %v103_v30 = vld [vmem:[#allocation9 + $0x70] sm:$0xff] (%p56_p1)  ;;  %p409_p2 = scmp.ne.s32.totalorder (%p56_p1), %s190_s16, %s408_s17  ;;  %p414_p4 = scmp.lt.s32.totalorder (%p56_p1), %s408_s17, %s408_s17 }
  0x63   : > { %340 = vrcp.f32 %v83_v4  ;;  %v293_v29 = vpack.c.bf16 (%p56_p1), %v102_v28, %v101_v27  ;;  %v104_v31 = vld [vmem:[#allocation9 + $0x78] sm:$0xff] (%p56_p1) }
  0x64   :  { %v296_v32 = vpack.c.bf16 (%p56_p1), %v104_v31, %v103_v30  ;;  %v219_v34 = vld [vmem:[%s587_s4] ss:$0 sm:$0xff] (%p56_p1)  ;;  %p415_p5 = por (%p56_p1), %p414_p4, %p413_p3 }
  0x65   :  { %279 = vmatpush3.bf16.msra.mxu0 (%p56_p1), %v278_v14 }
  0x66   :  { %280 = vmatprep.subr.bf16.mxu0 (%p56_p1), %v476_v10  ;;  %p416_p6 = pnand (%p56_p1), %p415_p5, %p409_p2 }
  0x69   :  { %282 = vmatpush3.bf16.msra.mxu0 (%p56_p1), %v281_v17 }
  0x6a   :  { %58 = sbr.rel (!%p56_p1) target bundleno = 61 (0x3d), region = 67  ;;  %283 = vmatprep.subr.bf16.mxu0 (%p56_p1), %v476_v10 }
  0x6d   : > { %v341_v5 = vpop.eup %340  ;;  %285 = vmatpush3.bf16.msra.mxu0 (%p56_p1), %v284_v20 }
  0x6e   : > { %v85_v6 = vmul.f32 %v468_v0, %v341_v5  ;;  %286 = vmatprep.subr.bf16.mxu0 (%p56_p1), %v476_v10 }
  0x70   : > { %87 = vst [vmem:[%s86_s12] sm:$0x1] %v85_v6 }
  0x71   :  { %288 = vmatpush3.bf16.msra.mxu0 %v287_v23 }
  0x72   :  { %289 = vmatprep.subr.bf16.mxu0 %v476_v10 }
  0x75   :  { %291 = vmatpush3.bf16.msra.mxu0 %v290_v26 }
  0x76   :  { %292 = vmatprep.subr.bf16.mxu0 %v476_v10 }
  0x77   :  { %v88_v33 = vld [vmem:[#allocation2] sm:$0xff] }
  0x79   :  { %294 = vmatpush3.bf16.msra.mxu0 %v293_v29 }
  0x7a   :  { %295 = vmatprep.subr.bf16.mxu0 %v476_v10 }
  0x7d   :  { %297 = vmatpush3.bf16.msra.mxu0 %v296_v32 }
  0x80   :  { %272 = vmatmul.mubr.f32.vlgmr.msra.gmra.mrb[0].mxu0 %v88_v33 }
 0x153   :  { %v178_v35 = vpop.f32.mrb[0].mxu0 }
 0x154   :  { %v179_v36 = vadd.f32 %v219_v34, %v178_v35  ;;  %v273_v37 = vpop.f32.mrb[1].mxu0 }
 0x156   :  { %182 = vst [vmem:[#allocation11] sm:$0xff] %v179_v36 }
 0x157   :  { %419 = shalt.err (!%p416_p6)
}
 0x158   :  { %s420_s20 = scalar_lea.hbm %s588_s5, 128 }
 0x159   :  { %p421_p7 = scmp.ne.s32.totalorder %s588_s5, %s420_s20  ;;  %p424_p8 = scmp.lt.u32.totalorder %s420_s20, %s588_s5 }
 0x15b   :  { %p426_p9 = pnand %p424_p8, %p421_p7 }
 0x15d   :  { %429 = shalt.err (!%p426_p9)
}
 0x15e   :  { %192 = dma.vmem_to_hbm [thread:$0]  %s190_s16, 128, %s588_s5, [#allocation8]  }
 0x15f   :  { %452 = dma.done.wait [#allocation8], 128  }
 0x160   :  { %453 = vsyncadd [#allocation8], 4294967168 }
 0x161   :  { %196 = vsyncpa [#allocation7], 1 }
 0x162   :  { %197 = vsyncpa [#allocation10], 1 }
 0x163   :  { %198 = vsyncpa [#allocation8], 1 }

</bundles_post_ra>
